<compile_context>
chip_gen: v7x
topology: tpu7x:2x2x1
jax: 0.10.0
libtpu: 0.0.40
codegen_flags: <defaults>
</compile_context>

<pallas_src>
import functools

import jax
import jax.numpy as jnp
import numpy as np
from jax.experimental import pallas as pl
from jax.experimental.pallas import tpu as pltpu

IMAGENET_MEAN = jnp.array([0.485, 0.456, 0.406], jnp.float32)
IMAGENET_STD = jnp.array([0.229, 0.224, 0.225], jnp.float32)

LAYERS = [("conv", 0), ("relu", None), ("conv", 2), ("relu", None),
          ("avgpool", None), ("conv", 5), ("relu", None)]
CONTENT_LAYERS = [5]
STYLE_LAYERS = [1, 3, 6]

CIN_PAD = 8  # conv0 Cin padded 3 -> 8 so im2col tap writes are 8-sublane aligned


# ----------------------------- small constants ---------------------------------

def _build_pool_mat(H, W):
    """pseudo-padded (H, W+2) activations -> 2x2 avg-pool already re-padded for conv5.
    (C, H*(W+2)) @ P -> (C, (H/2+2)*(W/2+2)+2). Exact 0 / 0.25 selection matrix;
    junk-column rows are all-zero so wrap garbage never leaks in."""
    Wp = W + 2
    H2, W2 = H // 2, W // 2
    Wp2 = W2 + 2
    PL2 = (H2 + 2) * Wp2 + 2
    P = np.zeros((H * Wp, PL2), np.float32)
    q = np.arange(H * Wp)
    qi, qj = q // Wp, q % Wp
    valid = qj < W
    u, v = qi[valid] // 2, qj[valid] // 2
    P[q[valid], (u + 1) * Wp2 + (v + 1)] = 0.25
    return P


# ----------------------------- fused Pallas kernel -----------------------------

def _nst_fused_kernel(x_ref, jmask_ref, pool_ref,
                      w0_ref, b0_ref, w1_ref, b1_ref, w2_ref, b2_ref,
                      s1_ref, s3_ref, c5_ref,
                      pad1, pad3, patch, *, H, W):
    f32 = jnp.float32
    Wp = W + 2
    Lpp = H * Wp
    H2, W2 = H // 2, W // 2
    Wp2 = W2 + 2
    Lpp2 = H2 * Wp2

    def conv3x3(src_ref, w_ref, b_ref, wp, lpp):
        # im2col into the shared patch scratch: one lane-shifted slice per tap,
        # 8-sublane aligned writes; then a single K = 9*8 matmul with fused bias.
        cin = src_ref.shape[0]
        for kh in range(3):
            for kw in range(3):
                t = kh * 3 + kw
                base = kh * wp + kw
                patch[t * cin:(t + 1) * cin, :lpp] = src_ref[:, base:base + lpp]
        return jnp.dot(w_ref[...], patch[:, :lpp],
                       preferred_element_type=f32) + b_ref[...]

    # layers 0,1: Conv(3->8, normalize folded into weights/bias) + ReLU
    r1 = jnp.maximum(conv3x3(x_ref, w0_ref, b0_ref, Wp, Lpp), 0.0)   # (8, Lpp) pseudo-padded
    s1_ref[...] = r1                                                 # style idx 1 (wrapper crops)

    # re-pad r1 for conv2: zero scratch, mask junk columns (VPU), one shifted slab store
    pad1[...] = jnp.zeros_like(pad1)
    pad1[:, Wp + 1:Wp + 1 + Lpp] = r1 * jmask_ref[...]

    # layers 2,3: Conv(8->8) + ReLU
    r3 = jnp.maximum(conv3x3(pad1, w1_ref, b1_ref, Wp, Lpp), 0.0)
    s3_ref[...] = r3                                                 # style idx 3 (wrapper crops)

    # layer 4: AvgPool2d(2,2) + re-pad for conv5, fused as one small constant matmul
    pad3[...] = jnp.dot(r3, pool_ref[...], preferred_element_type=f32)

    # layer 5: Conv(8->16) (content idx 5). ReLU for style idx 6 is applied to the
    # cropped output in the wrapper (ReLU commutes with the 0/1 crop).
    c5_ref[...] = conv3x3(pad3, w2_ref, b2_ref, Wp2, Lpp2)


# ----------------------------- "pretrained" model ------------------------------

def init_params(key):
    # deterministic synthetic weights standing in for the pretrained backbone
    def conv_init(k, cout, cin):
        kw, kb = jax.random.split(k)
        fan_in = cin * 9
        w = jax.random.normal(kw, (cout, cin, 3, 3), jnp.float32) * (2.0 / fan_in) ** 0.5
        b = 0.01 * jax.random.normal(kb, (cout,), jnp.float32)
        return w, b
    k0, k2, k5 = jax.random.split(key, 3)
    return {0: conv_init(k0, 8, 3), 2: conv_init(k2, 8, 8), 5: conv_init(k5, 16, 8)}


def model_forward(x_chw, params):
    """x_chw: (3, H, W) single image (the PyTorch module unsqueezes the batch)."""
    C, H, W = x_chw.shape
    assert C == 3 and H % 2 == 0 and W % 2 == 0
    Wp = W + 2
    Lpp = H * Wp
    PL = (H + 2) * Wp + 2
    H2, W2 = H // 2, W // 2
    Wp2 = W2 + 2
    Lpp2 = H2 * Wp2
    PL2 = (H2 + 2) * Wp2 + 2

    w0, b0 = params[0]
    w1, b1 = params[2]
    w2, b2 = params[5]
    c1, c2, c3 = w0.shape[0], w1.shape[0], w2.shape[0]

    # Fold Normalize into conv0: conv0((x-mean)/std) == conv0_folded(x) with
    # w0/std and b0 - sum(w0*mean/std), provided the padding value is `mean`.
    w0f = w0 / IMAGENET_STD[None, :, None, None]
    b0f = b0 - jnp.sum(w0f * IMAGENET_MEAN[None, :, None, None], axis=(1, 2, 3))

    def pack_w(w, cin_pad):  # OIHW -> (Cout, 9*cin_pad), column = (kh*3+kw)*cin_pad + ci
        co, ci = w.shape[0], w.shape[1]
        wkhkwc = jnp.transpose(w, (0, 2, 3, 1))                      # (co, kh, kw, ci)
        wp = jnp.zeros((co, 3, 3, cin_pad), jnp.float32).at[:, :, :, :ci].set(wkhkwc)
        return wp.reshape(co, 9 * cin_pad)

    # Image directly in the padded (CIN_PAD, (H+2)*(W+2)+2) layout. Border = per-channel
    # mean (== zero after the folded normalize); channels 3..7 and guard lanes are zero.
    xpad = jnp.broadcast_to(IMAGENET_MEAN[:, None, None], (3, H + 2, W + 2))
    xpad = xpad.at[:, 1:H + 1, 1:W + 1].set(x_chw)
    x_in = jnp.zeros((CIN_PAD, PL), jnp.float32).at[:3, :(H + 2) * Wp].set(
        xpad.reshape(3, (H + 2) * Wp))

    # (1, Lpp) 0/1 junk-column mask: 1 at the W valid cols of each pseudo-padded row.
    jmask = jnp.asarray((np.arange(Lpp) % Wp < W).astype(np.float32).reshape(1, Lpp))

    args = (x_in, jmask, jnp.asarray(_build_pool_mat(H, W)),
            pack_w(w0f, CIN_PAD), b0f.reshape(-1, 1),
            pack_w(w1, CIN_PAD), b1.reshape(-1, 1),
            pack_w(w2, CIN_PAD), b2.reshape(-1, 1))

    vmem = pl.BlockSpec(memory_space=pltpu.MemorySpace.VMEM)
    out_shape = (jax.ShapeDtypeStruct((c1, Lpp), jnp.float32),    # relu1, pseudo-padded
                 jax.ShapeDtypeStruct((c2, Lpp), jnp.float32),    # relu3, pseudo-padded
                 jax.ShapeDtypeStruct((c3, Lpp2), jnp.float32))   # conv5, pseudo-padded
    scratch = [pltpu.VMEM((c1, PL), jnp.float32),                 # pad1: relu1 re-padded
               pltpu.VMEM((c2, PL2), jnp.float32),                # pad3: pooled relu3 re-padded
               pltpu.VMEM((9 * CIN_PAD, Lpp), jnp.float32)]       # shared im2col scratch

    s1_pp, s3_pp, c5_pp = pl.pallas_call(
        functools.partial(_nst_fused_kernel, H=H, W=W),
        out_shape=out_shape,
        in_specs=[vmem] * len(args),
        out_specs=(vmem,) * 3,
        scratch_shapes=scratch,
    )(*args)

    def crop(f_pp, c, h, w):  # drop the 2 wrap ("junk") columns per row
        return f_pp.reshape(c, h, w + 2)[:, :, :w].reshape(c, h * w)

    s1 = crop(s1_pp, c1, H, W)
    s3 = crop(s3_pp, c2, H, W)
    c5 = crop(c5_pp, c3, H2, W2)
    s6 = jnp.maximum(c5, 0.0)

    content_features = [c5]
    style_features = [s1, s3, s6]
    return content_features, style_features


# ----------------------------- pure-JAX reference ------------------------------

def reference_forward(x_chw, params):
    x = (x_chw - IMAGENET_MEAN[:, None, None]) / IMAGENET_STD[:, None, None]
    x = x[None]
    content, style = [], []
    for i, (kind, pidx) in enumerate(LAYERS):
        if kind == "conv":
            w, b = params[pidx]
            x = jax.lax.conv_general_dilated(
                x, w, (1, 1), ((1, 1), (1, 1)),
                dimension_numbers=("NCHW", "OIHW", "NCHW")) + b[None, :, None, None]
        elif kind == "relu":
            x = jnp.maximum(x, 0.0)
        else:
            x = jax.lax.reduce_window(x, 0.0, jax.lax.add,
                                      (1, 1, 2, 2), (1, 1, 2, 2), "VALID") * 0.25
        if i in CONTENT_LAYERS or i in STYLE_LAYERS:
            F = x.reshape(x.shape[1], -1)
            if i in CONTENT_LAYERS:
                content.append(F)
            if i in STYLE_LAYERS:
                style.append(F)
    return content, style


if __name__ == "__main__":
    key = jax.random.PRNGKey(0)
    kx, kp = jax.random.split(key)
    x = jax.random.uniform(kx, (3, 16, 16), jnp.float32)    # (C, H, W) image
    params = init_params(kp)

    content, style = model_forward(x, params)
    jax.block_until_ready((content, style))

    ref_content, ref_style = reference_forward(x, params)
    for a, b in zip(content + style, ref_content + ref_style):
        np.testing.assert_allclose(np.asarray(a), np.asarray(b), rtol=1e-3, atol=1e-3)

    print("KERNEL_OK")
</pallas_src>

<mosaic_0001>
module attributes {stable_mosaic.version = 11 : i64} {
  func.func @_nst_fused_kernel(%arg0: memref<8x326xf32, #tpu.memory_space<vmem>>, %arg1: memref<1x288xf32, #tpu.memory_space<vmem>>, %arg2: memref<288x102xf32, #tpu.memory_space<vmem>>, %arg3: memref<8x72xf32, #tpu.memory_space<vmem>>, %arg4: memref<8x1xf32, #tpu.memory_space<vmem>>, %arg5: memref<8x72xf32, #tpu.memory_space<vmem>>, %arg6: memref<8x1xf32, #tpu.memory_space<vmem>>, %arg7: memref<16x72xf32, #tpu.memory_space<vmem>>, %arg8: memref<16x1xf32, #tpu.memory_space<vmem>>, %arg9: memref<8x288xf32, #tpu.memory_space<vmem>>, %arg10: memref<8x288xf32, #tpu.memory_space<vmem>>, %arg11: memref<16x80xf32, #tpu.memory_space<vmem>>, %arg12: memref<8x326xf32, #tpu.memory_space<vmem>>, %arg13: memref<8x102xf32, #tpu.memory_space<vmem>>, %arg14: memref<72x288xf32, #tpu.memory_space<vmem>>) attributes {dimension_semantics = [], scalar_prefetch = 0 : i64, scratch_operands = 3 : i64, tpu.core_type = #tpu.core_type<tc>} {
    %c0 = arith.constant 0 : index
    %c0_0 = arith.constant 0 : index
    %0 = vector.load %arg0[%c0, %c0_0] : memref<8x326xf32, #tpu.memory_space<vmem>>, vector<8x288xf32>
    %c0_1 = arith.constant 0 : index
    %c0_2 = arith.constant 0 : index
    %1 = vector.load %arg14[%c0_1, %c0_2] : memref<72x288xf32, #tpu.memory_space<vmem>>, vector<8x288xf32>
    tpu.vector_store %arg14[%c0_1, %c0_2], %0 {strides = array<i32>} : memref<72x288xf32, #tpu.memory_space<vmem>>, vector<8x288xf32>,
    %c0_3 = arith.constant 0 : index
    %c1 = arith.constant 1 : index
    %2 = vector.load %arg0[%c0_3, %c1] : memref<8x326xf32, #tpu.memory_space<vmem>>, vector<8x288xf32>
    %c8 = arith.constant 8 : index
    %c0_4 = arith.constant 0 : index
    %3 = vector.load %arg14[%c8, %c0_4] : memref<72x288xf32, #tpu.memory_space<vmem>>, vector<8x288xf32>
    tpu.vector_store %arg14[%c8, %c0_4], %2 {strides = array<i32>} : memref<72x288xf32, #tpu.memory_space<vmem>>, vector<8x288xf32>,
    %c0_5 = arith.constant 0 : index
    %c2 = arith.constant 2 : index
    %4 = vector.load %arg0[%c0_5, %c2] : memref<8x326xf32, #tpu.memory_space<vmem>>, vector<8x288xf32>
    %c16 = arith.constant 16 : index
    %c0_6 = arith.constant 0 : index
    %5 = vector.load %arg14[%c16, %c0_6] : memref<72x288xf32, #tpu.memory_space<vmem>>, vector<8x288xf32>
    tpu.vector_store %arg14[%c16, %c0_6], %4 {strides = array<i32>} : memref<72x288xf32, #tpu.memory_space<vmem>>, vector<8x288xf32>,
    %c0_7 = arith.constant 0 : index
    %c18 = arith.constant 18 : index
    %6 = vector.load %arg0[%c0_7, %c18] : memref<8x326xf32, #tpu.memory_space<vmem>>, vector<8x288xf32>
    %c24 = arith.constant 24 : index
    %c0_8 = arith.constant 0 : index
    %7 = vector.load %arg14[%c24, %c0_8] : memref<72x288xf32, #tpu.memory_space<vmem>>, vector<8x288xf32>
    tpu.vector_store %arg14[%c24, %c0_8], %6 {strides = array<i32>} : memref<72x288xf32, #tpu.memory_space<vmem>>, vector<8x288xf32>,
    %c0_9 = arith.constant 0 : index
    %c19 = arith.constant 19 : index
    %8 = vector.load %arg0[%c0_9, %c19] : memref<8x326xf32, #tpu.memory_space<vmem>>, vector<8x288xf32>
    %c32 = arith.constant 32 : index
    %c0_10 = arith.constant 0 : index
    %9 = vector.load %arg14[%c32, %c0_10] : memref<72x288xf32, #tpu.memory_space<vmem>>, vector<8x288xf32>
    tpu.vector_store %arg14[%c32, %c0_10], %8 {strides = array<i32>} : memref<72x288xf32, #tpu.memory_space<vmem>>, vector<8x288xf32>,
    %c0_11 = arith.constant 0 : index
    %c20 = arith.constant 20 : index
    %10 = vector.load %arg0[%c0_11, %c20] : memref<8x326xf32, #tpu.memory_space<vmem>>, vector<8x288xf32>
    %c40 = arith.constant 40 : index
    %c0_12 = arith.constant 0 : index
    %11 = vector.load %arg14[%c40, %c0_12] : memref<72x288xf32, #tpu.memory_space<vmem>>, vector<8x288xf32>
    tpu.vector_store %arg14[%c40, %c0_12], %10 {strides = array<i32>} : memref<72x288xf32, #tpu.memory_space<vmem>>, vector<8x288xf32>,
    %c0_13 = arith.constant 0 : index
    %c36 = arith.constant 36 : index
    %12 = vector.load %arg0[%c0_13, %c36] : memref<8x326xf32, #tpu.memory_space<vmem>>, vector<8x288xf32>
    %c48 = arith.constant 48 : index
    %c0_14 = arith.constant 0 : index
    %13 = vector.load %arg14[%c48, %c0_14] : memref<72x288xf32, #tpu.memory_space<vmem>>, vector<8x288xf32>
    tpu.vector_store %arg14[%c48, %c0_14], %12 {strides = array<i32>} : memref<72x288xf32, #tpu.memory_space<vmem>>, vector<8x288xf32>,
    %c0_15 = arith.constant 0 : index
    %c37 = arith.constant 37 : index
    %14 = vector.load %arg0[%c0_15, %c37] : memref<8x326xf32, #tpu.memory_space<vmem>>, vector<8x288xf32>
    %c56 = arith.constant 56 : index
    %c0_16 = arith.constant 0 : index
    %15 = vector.load %arg14[%c56, %c0_16] : memref<72x288xf32, #tpu.memory_space<vmem>>, vector<8x288xf32>
    tpu.vector_store %arg14[%c56, %c0_16], %14 {strides = array<i32>} : memref<72x288xf32, #tpu.memory_space<vmem>>, vector<8x288xf32>,
    %c0_17 = arith.constant 0 : index
    %c38 = arith.constant 38 : index
    %16 = vector.load %arg0[%c0_17, %c38] : memref<8x326xf32, #tpu.memory_space<vmem>>, vector<8x288xf32>
    %c64 = arith.constant 64 : index
    %c0_18 = arith.constant 0 : index
    %17 = vector.load %arg14[%c64, %c0_18] : memref<72x288xf32, #tpu.memory_space<vmem>>, vector<8x288xf32>
    tpu.vector_store %arg14[%c64, %c0_18], %16 {strides = array<i32>} : memref<72x288xf32, #tpu.memory_space<vmem>>, vector<8x288xf32>,
    %c0_19 = arith.constant 0 : index
    %c0_20 = arith.constant 0 : index
    %18 = vector.load %arg3[%c0_19, %c0_20] : memref<8x72xf32, #tpu.memory_space<vmem>>, vector<8x72xf32>
    %c0_21 = arith.constant 0 : index
    %c0_22 = arith.constant 0 : index
    %19 = vector.load %arg14[%c0_21, %c0_22] : memref<72x288xf32, #tpu.memory_space<vmem>>, vector<72x288xf32>
    %cst = arith.constant dense<0.000000e+00> : vector<8x288xf32>
    %20 = tpu.matmul %18, %19, %cst {dimension_numbers = #tpu.dot_dimension_numbers<[1], [0], [0], [1], [0, 0, 1, 1], [], []>} : vector<8x72xf32>, vector<72x288xf32>, vector<8x288xf32> -> vector<8x288xf32>
    %c0_23 = arith.constant 0 : index
    %c0_24 = arith.constant 0 : index
    %21 = vector.load %arg4[%c0_23, %c0_24] : memref<8x1xf32, #tpu.memory_space<vmem>>, vector<8x1xf32>
    %22 = vector.broadcast %21 : vector<8x1xf32> to vector<8x288xf32>
    %23 = arith.addf %20, %22 : vector<8x288xf32>
    %cst_25 = arith.constant 0.000000e+00 : f32
    %24 = vector.broadcast %cst_25 : f32 to vector<8x288xf32>
    %25 = arith.maximumf %23, %24 : vector<8x288xf32>
    %c0_26 = arith.constant 0 : index
    %c0_27 = arith.constant 0 : index
    %26 = vector.load %arg9[%c0_26, %c0_27] : memref<8x288xf32, #tpu.memory_space<vmem>>, vector<8x288xf32>
    tpu.vector_store %arg9[%c0_26, %c0_27], %25 {strides = array<i32>} : memref<8x288xf32, #tpu.memory_space<vmem>>, vector<8x288xf32>,
    %cst_28 = arith.constant 0.000000e+00 : f32
    %27 = vector.broadcast %cst_28 : f32 to vector<8x326xf32>
    %c0_29 = arith.constant 0 : index
    %c0_30 = arith.constant 0 : index
    %28 = vector.load %arg12[%c0_29, %c0_30] : memref<8x326xf32, #tpu.memory_space<vmem>>, vector<8x326xf32>
    tpu.vector_store %arg12[%c0_29, %c0_30], %27 {strides = array<i32>} : memref<8x326xf32, #tpu.memory_space<vmem>>, vector<8x326xf32>,
    %c0_31 = arith.constant 0 : index
    %c0_32 = arith.constant 0 : index
    %29 = vector.load %arg1[%c0_31, %c0_32] : memref<1x288xf32, #tpu.memory_space<vmem>>, vector<1x288xf32>
    %30 = vector.broadcast %29 : vector<1x288xf32> to vector<8x288xf32>
    %31 = arith.mulf %25, %30 : vector<8x288xf32>
    %c0_33 = arith.constant 0 : index
    %c19_34 = arith.constant 19 : index
    %32 = vector.load %arg12[%c0_33, %c19_34] : memref<8x326xf32, #tpu.memory_space<vmem>>, vector<8x288xf32>
    tpu.vector_store %arg12[%c0_33, %c19_34], %31 {strides = array<i32>} : memref<8x326xf32, #tpu.memory_space<vmem>>, vector<8x288xf32>,
    %c0_35 = arith.constant 0 : index
    %c0_36 = arith.constant 0 : index
    %33 = vector.load %arg12[%c0_35, %c0_36] : memref<8x326xf32, #tpu.memory_space<vmem>>, vector<8x288xf32>
    %c0_37 = arith.constant 0 : index
    %c0_38 = arith.constant 0 : index
    %34 = vector.load %arg14[%c0_37, %c0_38] : memref<72x288xf32, #tpu.memory_space<vmem>>, vector<8x288xf32>
    tpu.vector_store %arg14[%c0_37, %c0_38], %33 {strides = array<i32>} : memref<72x288xf32, #tpu.memory_space<vmem>>, vector<8x288xf32>,
    %c0_39 = arith.constant 0 : index
    %c1_40 = arith.constant 1 : index
    %35 = vector.load %arg12[%c0_39, %c1_40] : memref<8x326xf32, #tpu.memory_space<vmem>>, vector<8x288xf32>
    %c8_41 = arith.constant 8 : index
    %c0_42 = arith.constant 0 : index
    %36 = vector.load %arg14[%c8_41, %c0_42] : memref<72x288xf32, #tpu.memory_space<vmem>>, vector<8x288xf32>
    tpu.vector_store %arg14[%c8_41, %c0_42], %35 {strides = array<i32>} : memref<72x288xf32, #tpu.memory_space<vmem>>, vector<8x288xf32>,
    %c0_43 = arith.constant 0 : index
    %c2_44 = arith.constant 2 : index
    %37 = vector.load %arg12[%c0_43, %c2_44] : memref<8x326xf32, #tpu.memory_space<vmem>>, vector<8x288xf32>
    %c16_45 = arith.constant 16 : index
    %c0_46 = arith.constant 0 : index
    %38 = vector.load %arg14[%c16_45, %c0_46] : memref<72x288xf32, #tpu.memory_space<vmem>>, vector<8x288xf32>
    tpu.vector_store %arg14[%c16_45, %c0_46], %37 {strides = array<i32>} : memref<72x288xf32, #tpu.memory_space<vmem>>, vector<8x288xf32>,
    %c0_47 = arith.constant 0 : index
    %c18_48 = arith.constant 18 : index
    %39 = vector.load %arg12[%c0_47, %c18_48] : memref<8x326xf32, #tpu.memory_space<vmem>>, vector<8x288xf32>
    %c24_49 = arith.constant 24 : index
    %c0_50 = arith.constant 0 : index
    %40 = vector.load %arg14[%c24_49, %c0_50] : memref<72x288xf32, #tpu.memory_space<vmem>>, vector<8x288xf32>
    tpu.vector_store %arg14[%c24_49, %c0_50], %39 {strides = array<i32>} : memref<72x288xf32, #tpu.memory_space<vmem>>, vector<8x288xf32>,
    %c0_51 = arith.constant 0 : index
    %c19_52 = arith.constant 19 : index
    %41 = vector.load %arg12[%c0_51, %c19_52] : memref<8x326xf32, #tpu.memory_space<vmem>>, vector<8x288xf32>
    %c32_53 = arith.constant 32 : index
    %c0_54 = arith.constant 0 : index
    %42 = vector.load %arg14[%c32_53, %c0_54] : memref<72x288xf32, #tpu.memory_space<vmem>>, vector<8x288xf32>
    tpu.vector_store %arg14[%c32_53, %c0_54], %41 {strides = array<i32>} : memref<72x288xf32, #tpu.memory_space<vmem>>, vector<8x288xf32>,
    %c0_55 = arith.constant 0 : index
    %c20_56 = arith.constant 20 : index
    %43 = vector.load %arg12[%c0_55, %c20_56] : memref<8x326xf32, #tpu.memory_space<vmem>>, vector<8x288xf32>
    %c40_57 = arith.constant 40 : index
    %c0_58 = arith.constant 0 : index
    %44 = vector.load %arg14[%c40_57, %c0_58] : memref<72x288xf32, #tpu.memory_space<vmem>>, vector<8x288xf32>
    tpu.vector_store %arg14[%c40_57, %c0_58], %43 {strides = array<i32>} : memref<72x288xf32, #tpu.memory_space<vmem>>, vector<8x288xf32>,
    %c0_59 = arith.constant 0 : index
    %c36_60 = arith.constant 36 : index
    %45 = vector.load %arg12[%c0_59, %c36_60] : memref<8x326xf32, #tpu.memory_space<vmem>>, vector<8x288xf32>
    %c48_61 = arith.constant 48 : index
    %c0_62 = arith.constant 0 : index
    %46 = vector.load %arg14[%c48_61, %c0_62] : memref<72x288xf32, #tpu.memory_space<vmem>>, vector<8x288xf32>
    tpu.vector_store %arg14[%c48_61, %c0_62], %45 {strides = array<i32>} : memref<72x288xf32, #tpu.memory_space<vmem>>, vector<8x288xf32>,
    %c0_63 = arith.constant 0 : index
    %c37_64 = arith.constant 37 : index
    %47 = vector.load %arg12[%c0_63, %c37_64] : memref<8x326xf32, #tpu.memory_space<vmem>>, vector<8x288xf32>
    %c56_65 = arith.constant 56 : index
    %c0_66 = arith.constant 0 : index
    %48 = vector.load %arg14[%c56_65, %c0_66] : memref<72x288xf32, #tpu.memory_space<vmem>>, vector<8x288xf32>
    tpu.vector_store %arg14[%c56_65, %c0_66], %47 {strides = array<i32>} : memref<72x288xf32, #tpu.memory_space<vmem>>, vector<8x288xf32>,
    %c0_67 = arith.constant 0 : index
    %c38_68 = arith.constant 38 : index
    %49 = vector.load %arg12[%c0_67, %c38_68] : memref<8x326xf32, #tpu.memory_space<vmem>>, vector<8x288xf32>
    %c64_69 = arith.constant 64 : index
    %c0_70 = arith.constant 0 : index
    %50 = vector.load %arg14[%c64_69, %c0_70] : memref<72x288xf32, #tpu.memory_space<vmem>>, vector<8x288xf32>
    tpu.vector_store %arg14[%c64_69, %c0_70], %49 {strides = array<i32>} : memref<72x288xf32, #tpu.memory_space<vmem>>, vector<8x288xf32>,
    %c0_71 = arith.constant 0 : index
    %c0_72 = arith.constant 0 : index
    %51 = vector.load %arg5[%c0_71, %c0_72] : memref<8x72xf32, #tpu.memory_space<vmem>>, vector<8x72xf32>
    %c0_73 = arith.constant 0 : index
    %c0_74 = arith.constant 0 : index
    %52 = vector.load %arg14[%c0_73, %c0_74] : memref<72x288xf32, #tpu.memory_space<vmem>>, vector<72x288xf32>
    %cst_75 = arith.constant dense<0.000000e+00> : vector<8x288xf32>
    %53 = tpu.matmul %51, %52, %cst_75 {dimension_numbers = #tpu.dot_dimension_numbers<[1], [0], [0], [1], [0, 0, 1, 1], [], []>} : vector<8x72xf32>, vector<72x288xf32>, vector<8x288xf32> -> vector<8x288xf32>
    %c0_76 = arith.constant 0 : index
    %c0_77 = arith.constant 0 : index
    %54 = vector.load %arg6[%c0_76, %c0_77] : memref<8x1xf32, #tpu.memory_space<vmem>>, vector<8x1xf32>
    %55 = vector.broadcast %54 : vector<8x1xf32> to vector<8x288xf32>
    %56 = arith.addf %53, %55 : vector<8x288xf32>
    %cst_78 = arith.constant 0.000000e+00 : f32
    %57 = vector.broadcast %cst_78 : f32 to vector<8x288xf32>
    %58 = arith.maximumf %56, %57 : vector<8x288xf32>
    %c0_79 = arith.constant 0 : index
    %c0_80 = arith.constant 0 : index
    %59 = vector.load %arg10[%c0_79, %c0_80] : memref<8x288xf32, #tpu.memory_space<vmem>>, vector<8x288xf32>
    tpu.vector_store %arg10[%c0_79, %c0_80], %58 {strides = array<i32>} : memref<8x288xf32, #tpu.memory_space<vmem>>, vector<8x288xf32>,
    %c0_81 = arith.constant 0 : index
    %c0_82 = arith.constant 0 : index
    %60 = vector.load %arg2[%c0_81, %c0_82] : memref<288x102xf32, #tpu.memory_space<vmem>>, vector<288x102xf32>
    %cst_83 = arith.constant dense<0.000000e+00> : vector<8x102xf32>
    %61 = tpu.matmul %58, %60, %cst_83 {dimension_numbers = #tpu.dot_dimension_numbers<[1], [0], [0], [1], [0, 0, 1, 1], [], []>} : vector<8x288xf32>, vector<288x102xf32>, vector<8x102xf32> -> vector<8x102xf32>
    %c0_84 = arith.constant 0 : index
    %c0_85 = arith.constant 0 : index
    %62 = vector.load %arg13[%c0_84, %c0_85] : memref<8x102xf32, #tpu.memory_space<vmem>>, vector<8x102xf32>
    tpu.vector_store %arg13[%c0_84, %c0_85], %61 {strides = array<i32>} : memref<8x102xf32, #tpu.memory_space<vmem>>, vector<8x102xf32>,
    %c0_86 = arith.constant 0 : index
    %c0_87 = arith.constant 0 : index
    %63 = vector.load %arg13[%c0_86, %c0_87] : memref<8x102xf32, #tpu.memory_space<vmem>>, vector<8x80xf32>
    %c0_88 = arith.constant 0 : index
    %c0_89 = arith.constant 0 : index
    %64 = vector.load %arg14[%c0_88, %c0_89] : memref<72x288xf32, #tpu.memory_space<vmem>>, vector<8x80xf32>
    tpu.vector_store %arg14[%c0_88, %c0_89], %63 {strides = array<i32>} : memref<72x288xf32, #tpu.memory_space<vmem>>, vector<8x80xf32>,
    %c0_90 = arith.constant 0 : index
    %c1_91 = arith.constant 1 : index
    %65 = vector.load %arg13[%c0_90, %c1_91] : memref<8x102xf32, #tpu.memory_space<vmem>>, vector<8x80xf32>
    %c8_92 = arith.constant 8 : index
    %c0_93 = arith.constant 0 : index
    %66 = vector.load %arg14[%c8_92, %c0_93] : memref<72x288xf32, #tpu.memory_space<vmem>>, vector<8x80xf32>
    tpu.vector_store %arg14[%c8_92, %c0_93], %65 {strides = array<i32>} : memref<72x288xf32, #tpu.memory_space<vmem>>, vector<8x80xf32>,
    %c0_94 = arith.constant 0 : index
    %c2_95 = arith.constant 2 : index
    %67 = vector.load %arg13[%c0_94, %c2_95] : memref<8x102xf32, #tpu.memory_space<vmem>>, vector<8x80xf32>
    %c16_96 = arith.constant 16 : index
    %c0_97 = arith.constant 0 : index
    %68 = vector.load %arg14[%c16_96, %c0_97] : memref<72x288xf32, #tpu.memory_space<vmem>>, vector<8x80xf32>
    tpu.vector_store %arg14[%c16_96, %c0_97], %67 {strides = array<i32>} : memref<72x288xf32, #tpu.memory_space<vmem>>, vector<8x80xf32>,
    %c0_98 = arith.constant 0 : index
    %c10 = arith.constant 10 : index
    %69 = vector.load %arg13[%c0_98, %c10] : memref<8x102xf32, #tpu.memory_space<vmem>>, vector<8x80xf32>
    %c24_99 = arith.constant 24 : index
    %c0_100 = arith.constant 0 : index
    %70 = vector.load %arg14[%c24_99, %c0_100] : memref<72x288xf32, #tpu.memory_space<vmem>>, vector<8x80xf32>
    tpu.vector_store %arg14[%c24_99, %c0_100], %69 {strides = array<i32>} : memref<72x288xf32, #tpu.memory_space<vmem>>, vector<8x80xf32>,
    %c0_101 = arith.constant 0 : index
    %c11 = arith.constant 11 : index
    %71 = vector.load %arg13[%c0_101, %c11] : memref<8x102xf32, #tpu.memory_space<vmem>>, vector<8x80xf32>
    %c32_102 = arith.constant 32 : index
    %c0_103 = arith.constant 0 : index
    %72 = vector.load %arg14[%c32_102, %c0_103] : memref<72x288xf32, #tpu.memory_space<vmem>>, vector<8x80xf32>
    tpu.vector_store %arg14[%c32_102, %c0_103], %71 {strides = array<i32>} : memref<72x288xf32, #tpu.memory_space<vmem>>, vector<8x80xf32>,
    %c0_104 = arith.constant 0 : index
    %c12 = arith.constant 12 : index
    %73 = vector.load %arg13[%c0_104, %c12] : memref<8x102xf32, #tpu.memory_space<vmem>>, vector<8x80xf32>
    %c40_105 = arith.constant 40 : index
    %c0_106 = arith.constant 0 : index
    %74 = vector.load %arg14[%c40_105, %c0_106] : memref<72x288xf32, #tpu.memory_space<vmem>>, vector<8x80xf32>
    tpu.vector_store %arg14[%c40_105, %c0_106], %73 {strides = array<i32>} : memref<72x288xf32, #tpu.memory_space<vmem>>, vector<8x80xf32>,
    %c0_107 = arith.constant 0 : index
    %c20_108 = arith.constant 20 : index
    %75 = vector.load %arg13[%c0_107, %c20_108] : memref<8x102xf32, #tpu.memory_space<vmem>>, vector<8x80xf32>
    %c48_109 = arith.constant 48 : index
    %c0_110 = arith.constant 0 : index
    %76 = vector.load %arg14[%c48_109, %c0_110] : memref<72x288xf32, #tpu.memory_space<vmem>>, vector<8x80xf32>
    tpu.vector_store %arg14[%c48_109, %c0_110], %75 {strides = array<i32>} : memref<72x288xf32, #tpu.memory_space<vmem>>, vector<8x80xf32>,
    %c0_111 = arith.constant 0 : index
    %c21 = arith.constant 21 : index
    %77 = vector.load %arg13[%c0_111, %c21] : memref<8x102xf32, #tpu.memory_space<vmem>>, vector<8x80xf32>
    %c56_112 = arith.constant 56 : index
    %c0_113 = arith.constant 0 : index
    %78 = vector.load %arg14[%c56_112, %c0_113] : memref<72x288xf32, #tpu.memory_space<vmem>>, vector<8x80xf32>
    tpu.vector_store %arg14[%c56_112, %c0_113], %77 {strides = array<i32>} : memref<72x288xf32, #tpu.memory_space<vmem>>, vector<8x80xf32>,
    %c0_114 = arith.constant 0 : index
    %c22 = arith.constant 22 : index
    %79 = vector.load %arg13[%c0_114, %c22] : memref<8x102xf32, #tpu.memory_space<vmem>>, vector<8x80xf32>
    %c64_115 = arith.constant 64 : index
    %c0_116 = arith.constant 0 : index
    %80 = vector.load %arg14[%c64_115, %c0_116] : memref<72x288xf32, #tpu.memory_space<vmem>>, vector<8x80xf32>
    tpu.vector_store %arg14[%c64_115, %c0_116], %79 {strides = array<i32>} : memref<72x288xf32, #tpu.memory_space<vmem>>, vector<8x80xf32>,
    %c0_117 = arith.constant 0 : index
    %c0_118 = arith.constant 0 : index
    %81 = vector.load %arg7[%c0_117, %c0_118] : memref<16x72xf32, #tpu.memory_space<vmem>>, vector<16x72xf32>
    %c0_119 = arith.constant 0 : index
    %c0_120 = arith.constant 0 : index
    %82 = vector.load %arg14[%c0_119, %c0_120] : memref<72x288xf32, #tpu.memory_space<vmem>>, vector<72x80xf32>
    %cst_121 = arith.constant dense<0.000000e+00> : vector<16x80xf32>
    %83 = tpu.matmul %81, %82, %cst_121 {dimension_numbers = #tpu.dot_dimension_numbers<[1], [0], [0], [1], [0, 0, 1, 1], [], []>} : vector<16x72xf32>, vector<72x80xf32>, vector<16x80xf32> -> vector<16x80xf32>
    %c0_122 = arith.constant 0 : index
    %c0_123 = arith.constant 0 : index
    %84 = vector.load %arg8[%c0_122, %c0_123] : memref<16x1xf32, #tpu.memory_space<vmem>>, vector<16x1xf32>
    %85 = vector.broadcast %84 : vector<16x1xf32> to vector<16x80xf32>
    %86 = arith.addf %83, %85 : vector<16x80xf32>
    %c0_124 = arith.constant 0 : index
    %c0_125 = arith.constant 0 : index
    %87 = vector.load %arg11[%c0_124, %c0_125] : memref<16x80xf32, #tpu.memory_space<vmem>>, vector<16x80xf32>
    tpu.vector_store %arg11[%c0_124, %c0_125], %86 {strides = array<i32>} : memref<16x80xf32, #tpu.memory_space<vmem>>, vector<16x80xf32>,
    return
  }
}

</mosaic_0001>

<bundles_post_ra>
// kernel: tpu_custom_call.1
= control target key start
LH: loop header
LB: loop body
LE: loop exit
PB: predicated region body
PF: predicated region fallthrough
CT: control target
= control target key end

     0   :  { %17 = vsyncpa [#allocation6], 0  ;;  %s1978_s0 = inlined_call_operand.vmem [shape: f32[8,326], index: 0, kind: input, shape index: {}]   ;;  %s1979_s1 = inlined_call_operand.hbm [shape: f32[1,288], index: 1, kind: input, shape index: {}]   ;;  %s1980_s2 = inlined_call_operand.hbm [shape: f32[288,102], index: 2, kind: input, shape index: {}]   ;;  %s1981_s3 = inlined_call_operand.hbm [shape: f32[8,72], index: 3, kind: input, shape index: {}]   ;;  %s1982_s4 = inlined_call_operand.vmem [shape: f32[8,1], index: 4, kind: input, shape index: {}]   ;;  %s1983_s5 = inlined_call_operand.vmem [shape: f32[8,72], index: 5, kind: input, shape index: {}]   ;;  %s1984_s6 = inlined_call_operand.vmem [shape: f32[8,1], index: 6, kind: input, shape index: {}]   ;;  %s1985_s7 = inlined_call_operand.vmem [shape: f32[16,72], index: 7, kind: input, shape index: {}]   ;;  %s1986_s8 = inlined_call_operand.vmem [shape: f32[16,1], index: 8, kind: input, shape index: {}]   ;;  %s1987_s9 = inlined_call_operand.hbm [shape: f32[8,288], index: 9, kind: output, shape index: {0}]   ;;  %s1988_s10 = inlined_call_operand.hbm [shape: f32[8,288], index: 10, kind: output, shape index: {1}]   ;;  %s1989_s11 = inlined_call_operand.hbm [shape: f32[16,80], index: 11, kind: output, shape index: {2}]  }
   0x1   :  { %18 = vsyncpa [#allocation9], 0 }
   0x2   :  { %19 = vsyncpa [#allocation7], 0 }
   0x3   :  { %20 = vsyncpa [#allocation13], 0  ;;  %s1641_s17 = smov [#allocation8]   ;;  %s1501_s21 = scalar_lea.hbm %s1980_s2, 4608 }
   0x4   :  { %s38_s18 = sshll.u32 %s1641_s17, 4  ;;  %p1502_p0 = scmp.ne.s32.totalorder %s1980_s2, %s1501_s21  ;;  %s39_s18 = int_to_ptr.vmem [resolvable:$true] %s38_s18 }
   0x5   :  { %p1505_p1 = scmp.lt.u32.totalorder %s1501_s21, %s1980_s2 }
   0x7   :  { %p1507_p2 = pnand %p1505_p1, %p1502_p0 }
   0x9   :  { %1510 = shalt.err (!%p1507_p2)
}
   0xa   :  { %s1511_s26 = scalar_lea.vmem %s39_s18, 4608  ;;  %p1516_p4 = scmp.lt.s32.totalorder %s39_s18, %s39_s18 }
   0xb   :  { %p1512_p3 = scmp.ne.s32.totalorder %s39_s18, %s1511_s26  ;;  %p1517_p5 = scmp.lt.s32.totalorder %s1511_s26, %s1511_s26 }
   0xd   :  { %p1518_p6 = por %p1517_p5, %p1516_p4 }
   0xf   :  { %p1519_p7 = pnand %p1518_p6, %p1512_p3 }
  0x11   :  { %1522 = shalt.err (!%p1519_p7)
}
  0x12   :  { %s1642_s27 = smov 128   ;;  %s1643_s28 = smov 8  }
  0x13   :  { %44 = dma.hbm_to_vmem [thread:$0]  %s1980_s2, 4608, %s39_s18, [#allocation9], %s1642_s27, %s1642_s27, %s1643_s28  }
  0x14   :  { %s1644_s12 = smov [#allocation5]   ;;  %s1645_s14 = smov [#allocation10]  }
  0x15   :  { %s29_s13 = sshll.u32 %s1644_s12, 4  ;;  %s51_s15 = sshll.u32 %s1645_s14, 4  ;;  %s30_s13 = int_to_ptr.vmem [resolvable:$true] %s29_s13  ;;  %s52_s15 = int_to_ptr.vmem [resolvable:$true] %s51_s15 }
  0x16   :  { %s1523_s19 = scalar_lea.hbm %s1979_s1, 48 }
  0x17   :  { %p1524_p8 = scmp.ne.s32.totalorder %s1979_s1, %s1523_s19  ;;  %p1527_p9 = scmp.lt.u32.totalorder %s1523_s19, %s1979_s1 }
  0x19   :  { %p1529_p10 = pnand %p1527_p9, %p1524_p8 }
  0x1b   :  { %1532 = shalt.err (!%p1529_p10)
}
  0x1c   :  { %s1533_s2 = scalar_lea.vmem %s30_s13, 48  ;;  %s1537_s18 = scalar_lea.vmem %s30_s13, 64 }
  0x1d   :  { %p1534_p11 = scmp.ne.s32.totalorder %s30_s13, %s1533_s2  ;;  %p1538_p12 = scmp.lt.s32.totalorder %s30_s13, %s30_s13 }
  0x1e   :  { %p1539_p13 = scmp.lt.s32.totalorder %s1537_s18, %s1533_s2 }
  0x20   :  { %p1540_p0 = por %p1539_p13, %p1538_p12 }
  0x22   :  { %p1541_p1 = pnand %p1540_p0, %p1534_p11 }
  0x24   :  { %1544 = shalt.err (!%p1541_p1)
}
  0x25   :  { %32 = dma.hbm_to_vmem [thread:$0]  %s1979_s1, 48, %s30_s13, [#allocation6]  }
  0x26   :  { %s1545_s30 = scalar_lea.hbm %s1981_s3, 128 }
  0x27   :  { %p1546_p2 = scmp.ne.s32.totalorder %s1981_s3, %s1545_s30  ;;  %p1549_p3 = scmp.lt.u32.totalorder %s1545_s30, %s1981_s3 }
  0x29   :  { %p1551_p4 = pnand %p1549_p3, %p1546_p2 }
  0x2b   :  { %1554 = shalt.err (!%p1551_p4)
}
  0x2c   :  { %s1555_s19 = scalar_lea.vmem %s52_s15, 128  ;;  %p1560_p6 = scmp.lt.s32.totalorder %s52_s15, %s52_s15 }
  0x2d   :  { %p1556_p5 = scmp.ne.s32.totalorder %s52_s15, %s1555_s19  ;;  %p1561_p7 = scmp.lt.s32.totalorder %s1555_s19, %s1555_s19 }
  0x2f   :  { %p1562_p8 = por %p1561_p7, %p1560_p6 }
  0x31   :  { %p1563_p9 = pnand %p1562_p8, %p1556_p5 }
  0x33   :  { %1566 = shalt.err (!%p1563_p9)
}
  0x34   :  { %54 = dma.hbm_to_vmem [thread:$0]  %s1981_s3, 128, %s52_s15, [#allocation9]  }
  0x35   :  { %1633 = dma.done.wait [#allocation6], 48  }
  0x36   :  { %1634 = vsyncadd [#allocation6], 4294967248 }
  0x37   :  { %1635 = dma.done.wait [#allocation9], 4736  }
  0x38   :  { %1636 = vsyncadd [#allocation9], 4294962560  ;;  %vm79_vm0 = vcmask 261120   ;;  %v82_v0 = vld [vmem:[%s1978_s0 + $0x8] sm:$0xff]  ;;  %v81_v1 = vld [vmem:[%s1978_s0] sm:$0xff]  ;;  %s1646_s24 = smov 127  }
  0x39   :  { %v83_v2 = vld [vmem:[%s1978_s0 + $0x10] sm:$0xff]  ;;  %89 = vrot.lane.b32.xlu0 %v82_v0, %s1646_s24  ;;  %87 = vrot.lane.b32.xlu1 %v81_v1, %s1646_s24  ;;  %v1647_v3 = vmov 0.0|0.0   ;;  %s1648_s3 = smov 126   ;;  %s1649_s15 = smov 110   ;;  %v1654_v4 = vmov 0.0   ;;  %vm1655_vm1 = vmmov 0  }
  0x3a   :  { %80 = vst.msk [vmem:[#allocation4 + $0x10] sm:$0xff] %vm79_vm0, %v83_v2  ;;  %1379 = vmatprep.subr.bf16.mxu1 %v1647_v3  ;;  %s1650_s0 = smov 109   ;;  %s1651_s25 = smov 108   ;;  %434 = vst [vmem:[#allocation2] sm:$0xff] %v1654_v4  ;;  %351 = vmatprep.mubr.f32.mxu0 %v1654_v4  ;;  %v1657_v5 = vmov 0   ;;  %v277_v6 = vld [vmem:[%s1982_s4] sm:$0xff] }
  0x3b   :  { %s1652_s26 = smov 92   ;;  %s1653_s29 = smov 91   ;;  %1307 = vmatprep.mubr.msk.f32.mxu1 %vm1655_vm1, %v1654_v4  ;;  %1499 = vset.pattern.permute.xlu0 %v1657_v5  ;;  %vm93_vm2 = vcmask 1039360   ;;  %vm114_vm3 = vcmask 1031168   ;;  %vm135_vm4 = vcmask 900096   ;;  %vm156_vm5 = vcmask 891904  }
  0x3c   :  { %s1656_s30 = smov 90   ;;  %1500 = vset.pattern.permute.xlu1 %v1657_v5  ;;  %vm177_vm6 = vcmask 883712   ;;  %vm198_vm7 = vcmask 752640   ;;  %vm219_vm8 = vcmask 744448   ;;  %vm240_vm9 = vcmask 736256   ;;  %s1658_s4 = smov 19  }
  0x3d   :  { %91 = vrot.lane.b32.xlu0 %v83_v2, %s1646_s24  ;;  %110 = vrot.lane.b32.xlu1 %v82_v0, %s1648_s3  ;;  %vm283_vm10 = vcmask 588800   ;;  %vm436_vm11 = vcmask 572416   ;;  %vm473_vm12 = vcmask 1047704   ;;  %vm467_vm13 = vcmask 154624   ;;  %s1660_s1 = smov 118   ;;  %s1661_s13 = smov 116  }
  0x3e   :  { %437 = vst.msk [vmem:[#allocation2 + $0x10] sm:$0xff] %vm436_vm11, %v1654_v4  ;;  %vm476_vm14 = vcmask 416768   ;;  %vm1007_vm15 = vcmask 834560   ;;  %s1662_s20 = smov 106   ;;  %s1663_s21 = smov 107  }
  0x41   :  { %112 = vrot.lane.b32.xlu0 %v83_v2, %s1648_s3  ;;  %131 = vrot.lane.b32.xlu1 %v82_v0, %s1649_s15  ;;  %v252_v17 = vld [vmem:[#allocation4 + $0x10] sm:$0xff] }
  0x45   :  { %133 = vrot.lane.b32.xlu0 %v83_v2, %s1649_s15  ;;  %108 = vrot.lane.b32.xlu1 %v81_v1, %s1648_s3 }
  0x49   :  { %129 = vrot.lane.b32.xlu0 %v81_v1, %s1649_s15  ;;  %152 = vrot.lane.b32.xlu1 %v82_v0, %s1650_s0 }
  0x4d   :  { %154 = vrot.lane.b32.xlu0 %v83_v2, %s1650_s0  ;;  %173 = vrot.lane.b32.xlu1 %v82_v0, %s1651_s25 }
  0x51   :  { %175 = vrot.lane.b32.xlu0 %v83_v2, %s1651_s25  ;;  %150 = vrot.lane.b32.xlu1 %v81_v1, %s1650_s0 }
  0x55   :  { %171 = vrot.lane.b32.xlu0 %v81_v1, %s1651_s25  ;;  %194 = vrot.lane.b32.xlu1 %v82_v0, %s1652_s26 }
  0x59   :  { %196 = vrot.lane.b32.xlu0 %v83_v2, %s1652_s26  ;;  %215 = vrot.lane.b32.xlu1 %v82_v0, %s1653_s29 }
  0x5d   :  { %217 = vrot.lane.b32.xlu0 %v83_v2, %s1653_s29  ;;  %192 = vrot.lane.b32.xlu1 %v81_v1, %s1652_s26 }
  0x61   :  { %213 = vrot.lane.b32.xlu0 %v81_v1, %s1653_s29  ;;  %236 = vrot.lane.b32.xlu1 %v82_v0, %s1656_s30 }
  0x65   :  { %238 = vrot.lane.b32.xlu0 %v83_v2, %s1656_s30  ;;  %234 = vrot.lane.b32.xlu1 %v81_v1, %s1656_s30  ;;  %v249_v2 = vld [vmem:[#allocation10] sm:$0xff] }
  0x69   :  { %280 = vperm.xlu0 %1499, %v277_v6  }
  0xab   :  { %v90_v7 = vpop.permute.xlu0 %89  ;;  %v88_v8 = vpop.permute.xlu1 %87 }
  0xac   :  { %v94_v9 = vsel %vm93_vm2, %v88_v8, %v90_v7 }
  0xad   :  { %v1365_v14 = vpack.c.bf16 %v94_v9, %v81_v1 }
  0xaf   :  { %v92_v10 = vpop.permute.xlu0 %91  ;;  %v111_v11 = vpop.permute.xlu1 %110 }
  0xb0   :  { %v95_v12 = vsel %vm93_vm2, %v90_v7, %v92_v10  ;;  %101 = vst.msk [vmem:[#allocation4 + $0x28] sm:$0xff] %vm79_vm0, %v92_v10  ;;  %v440_v7 = vlaneseq }
  0xb1   :  { %v1363_v13 = vpack.c.bf16 %v95_v12, %v82_v0 }
  0xb2   :  { %v441_v8 = vshrl.u32 %v440_v7, 7 }
  0xb3   :  { %v113_v15 = vpop.permute.xlu0 %112  ;;  %v132_v16 = vpop.permute.xlu1 %131  ;;  %1364 = vmatprep.subr.bf16.mxu0 %v1363_v13 }
  0xb4   :  { %122 = vst.msk [vmem:[#allocation4 + $0x40] sm:$0xff] %vm79_vm0, %v113_v15  ;;  %1366 = vmatpush1.bf16.msra.mxu0 %v1365_v14  ;;  %v116_v21 = vsel %vm114_vm3, %v111_v11, %v113_v15  ;;  %v442_v9 = vsub.s32 0, %v441_v8 }
  0xb7   :  { %v134_v18 = vpop.permute.xlu0 %133  ;;  %v109_v19 = vpop.permute.xlu1 %108  ;;  %v255_v20 = vld [vmem:[#allocation4 + $0x28] sm:$0xff] }
  0xb8   :  { %v137_v22 = vsel %vm135_vm4, %v132_v16, %v134_v18  ;;  %143 = vst.msk [vmem:[#allocation4 + $0x58] sm:$0xff] %vm79_vm0, %v134_v18  ;;  %v1380_v23 = vpack.c.bf16 %v255_v20, %v252_v17  ;;  %v115_v27 = vsel %vm114_vm3, %v109_v19, %v111_v11  ;;  %v438_v11 = vld [vmem:[#allocation5] sm:$0x7]  ;;  %v450_v17 = vsub.s32 2, %v441_v8 }
  0xb9   :  { %v1367_v24 = vpack.c.bf16 %v137_v22, %v116_v21  ;;  %v443_v14 = vrot.slane %v438_v11, %v442_v9 }
  0xba   :  { %1381 = vmatpush3.bf16.msra.mxu1 %v1380_v23 }
  0xbb   :  { %v130_v25 = vpop.permute.xlu0 %129  ;;  %v153_v26 = vpop.permute.xlu1 %152  ;;  %1382 = vmatprep.subr.bf16.mxu1 %v1647_v3  ;;  %1368 = vmatprep.subr.bf16.mxu0 %v1367_v24  ;;  %v258_v32 = vld [vmem:[#allocation4 + $0x40] sm:$0xff] }
  0xbc   :  { %v136_v28 = vsel %vm135_vm4, %v130_v25, %v132_v16  ;;  %v446_v16 = vsub.s32 1, %v441_v8  ;;  %v451_v25 = vrot.slane %v438_v11, %v450_v17 }
  0xbd   :  { %v1369_v29 = vpack.c.bf16 %v136_v28, %v115_v27 }
  0xbe   :  { %v447_v23 = vrot.slane %v438_v11, %v446_v16 }
  0xbf   :  { %v155_v30 = vpop.permute.xlu0 %154  ;;  %v174_v31 = vpop.permute.xlu1 %173  ;;  %v261_v33 = vld [vmem:[#allocation4 + $0x58] sm:$0xff]  ;;  %1370 = vmatpush1.bf16.msra.mxu0 %v1369_v29 }
  0xc0   :  { %164 = vst.msk [vmem:[#allocation4 + $0x70] sm:$0xff] %vm79_vm0, %v155_v30  ;;  %v1383_v34 = vpack.c.bf16 %v261_v33, %v258_v32  ;;  %v158_v37 = vsel %vm156_vm5, %v153_v26, %v155_v30 }
  0xc2   :  { %1384 = vmatpush3.bf16.msra.mxu1 %v1383_v34 }
  0xc3   :  { %v176_v35 = vpop.permute.xlu0 %175  ;;  %v151_v36 = vpop.permute.xlu1 %150  ;;  %1385 = vmatprep.subr.bf16.mxu1 %v1647_v3 }
  0xc4   :  { %v179_v38 = vsel %vm177_vm6, %v174_v31, %v176_v35  ;;  %185 = vst.msk [vmem:[#allocation4 + $0x88] sm:$0xff] %vm79_vm0, %v176_v35  ;;  %v157_v42 = vsel %vm156_vm5, %v151_v36, %v153_v26 }
  0xc5   :  { %v1371_v39 = vpack.c.bf16 %v179_v38, %v158_v37  ;;  %v672_v37 = vld [vmem:[%s1984_s6] sm:$0xff] }
  0xc7   :  { %v172_v40 = vpop.permute.xlu0 %171  ;;  %v195_v41 = vpop.permute.xlu1 %194  ;;  %1372 = vmatprep.subr.bf16.mxu0 %v1371_v39  ;;  %v264_v47 = vld [vmem:[#allocation4 + $0x70] sm:$0xff] }
  0xc8   :  { %v178_v43 = vsel %vm177_vm6, %v172_v40, %v174_v31 }
  0xc9   :  { %v1373_v44 = vpack.c.bf16 %v178_v43, %v157_v42 }
  0xcb   :  { %v197_v45 = vpop.permute.xlu0 %196  ;;  %v216_v46 = vpop.permute.xlu1 %215  ;;  %v267_v48 = vld [vmem:[#allocation4 + $0x88] sm:$0xff]  ;;  %1374 = vmatpush1.bf16.msra.mxu0 %v1373_v44 }
  0xcc   :  { %206 = vst.msk [vmem:[#allocation4 + $0xa0] sm:$0xff] %vm79_vm0, %v197_v45  ;;  %v1386_v49 = vpack.c.bf16 %v267_v48, %v264_v47  ;;  %v200_v52 = vsel %vm198_vm7, %v195_v41, %v197_v45 }
  0xce   :  { %1387 = vmatpush3.bf16.msra.mxu1 %v1386_v49 }
  0xcf   :  { %v218_v50 = vpop.permute.xlu0 %217  ;;  %v193_v51 = vpop.permute.xlu1 %192  ;;  %1388 = vmatprep.subr.bf16.mxu1 %v1647_v3 }
  0xd0   :  { %v221_v53 = vsel %vm219_vm8, %v216_v46, %v218_v50  ;;  %227 = vst.msk [vmem:[#allocation4 + $0xb8] sm:$0xff] %vm79_vm0, %v218_v50  ;;  %v199_v57 = vsel %vm198_vm7, %v193_v51, %v195_v41 }
  0xd1   :  { %v1375_v54 = vpack.c.bf16 %v221_v53, %v200_v52 }
  0xd3   :  { %v214_v55 = vpop.permute.xlu0 %213  ;;  %v237_v56 = vpop.permute.xlu1 %236  ;;  %1376 = vmatprep.subr.bf16.mxu0 %v1375_v54  ;;  %v270_v62 = vld [vmem:[#allocation4 + $0xa0] sm:$0xff] }
  0xd4   :  { %v220_v58 = vsel %vm219_vm8, %v214_v55, %v216_v46 }
  0xd5   :  { %v1377_v59 = vpack.c.bf16 %v220_v58, %v199_v57 }
  0xd7   :  { %v239_v60 = vpop.permute.xlu0 %238  ;;  %v235_v61 = vpop.permute.xlu1 %234  ;;  %v273_v63 = vld [vmem:[#allocation4 + $0xb8] sm:$0xff]  ;;  %1378 = vmatpush1.bf16.msra.mxu0 %v1377_v59 }
  0xd8   :  { %v242_v0 = vsel %vm240_vm9, %v237_v56, %v239_v60  ;;  %248 = vst.msk [vmem:[#allocation4 + $0xd0] sm:$0xff] %vm79_vm0, %v239_v60  ;;  %v1389_v1 = vpack.c.bf16 %v273_v63, %v270_v62  ;;  %v241_v5 = vsel %vm240_vm9, %v235_v61, %v237_v56 }
  0xd9   :  { %303 = vmatprep.subr.mxu0 %v242_v0 }
  0xda   :  { %1390 = vmatpush3.bf16.msra.mxu1 %v1389_v1 }
  0xdb   :  { %1305 = vmatprep.subr.mxu1 %v1654_v4  ;;  %304 = vmatpush1.msra.mxu0 %v241_v5 }
  0xdc   :  { %1211 = vmatmul.mubr.msk.f32.vlgmr.msra.gmra.mrb[0].mxu0 %vm283_vm10, %v249_v2 }
  0xdd   :  { %745 = vmatprep.mubr.f32.mxu0 %v1654_v4 }
  0xdf   :  { %v276_v6 = vld [vmem:[#allocation4 + $0xd0] sm:$0xff] }
  0xe0   :  { %1306 = vmatpush3.msra.mxu1 %v276_v6 }
  0xe1   :  { %1308 = vmatmul.mubr.msk.f32.vlgmr.msra.gmra.mrb[0].mxu1 %vm283_vm10, %v249_v2  ;;  %1407 = vmatprep.subr.bf16.mxu1 %v1647_v3 }
  0xe2   :  { %1328 = vmatprep.mubr.msk.f32.mxu1 %vm1655_vm1, %v1654_v4 }
  0xe8   :  { %v281_v10 = vpop.permute.xlu0 %280 }
 0x1af   :  { %v353_v12 = vpop.f32.mrb[0].mxu0 }
 0x1b0   :  { %v354_v13 = vadd.f32 %v353_v12, %v281_v10  ;;  %v355_v15 = vpop.f32.mrb[1].mxu0 }
 0x1b1   :  { %v356_v18 = vadd.f32 %v355_v15, %v281_v10 }
 0x1b2   :  { %v428_v19 = vmax.f32 %v354_v13, 0.0 }
 0x1b3   :  { %v429_v20 = vmax.f32 %v356_v18, 0.0 }
 0x1b4   :  { %431 = vst [vmem:[#allocation11] sm:$0xff] %v428_v19  ;;  %v455_v21 = vmul.f32 %v443_v14, %v428_v19  ;;  %v424_v22 = vpop.f32.mrb[0].mxu1 }
 0x1b5   :  { %v425_v24 = vadd.f32 %v424_v22, %v281_v10  ;;  %432 = vst [vmem:[#allocation11 + $0x8] sm:$0xff] %v429_v20  ;;  %v1309_v26 = vpop.f32.mrb[1].mxu1  ;;  %v456_v28 = vmul.f32 %v447_v23, %v429_v20 }
 0x1b6   :  { %461 = vrot.lane.b32.xlu1 %v455_v21, %s1658_s4 }
 0x1b7   :  { %v430_v27 = vmax.f32 %v425_v24, 0.0 }
 0x1b9   :  { %433 = vst.msk [vmem:[#allocation11 + $0x10] sm:$0xff] %vm79_vm0, %v430_v27  ;;  %v457_v29 = vmul.f32 %v451_v25, %v430_v27 }
 0x1ba   :  { %463 = vrot.lane.b32.xlu1 %v456_v28, %s1658_s4 }
 0x1bb   :  { %465 = vrot.lane.b32.xlu0 %v457_v29, %s1658_s4  ;;  %v844_v29 = vld [vmem:[#allocation8 + $0x80] sm:$0xff] }
 0x228   :  { %v462_v30 = vpop.permute.xlu1 %461 }
 0x229   :  { %474 = vst.msk [vmem:[#allocation2] sm:$0xff] %vm473_vm12, %v462_v30 }
 0x22c   :  { %v464_v31 = vpop.permute.xlu1 %463 }
 0x22d   :  { %v466_v32 = vpop.permute.xlu0 %465  ;;  %v468_v33 = vsel %vm467_vm13, %v462_v30, %v464_v31  ;;  %v845_v30 = vld [vmem:[#allocation8 + $0x88] sm:$0xff] }
 0x22e   :  { %v469_v34 = vsel %vm467_vm13, %v464_v31, %v466_v32  ;;  %v828_v31 = vld [vmem:[#allocation8] sm:$0xff]  ;;  %v829_v32 = vld [vmem:[#allocation8 + $0x8] sm:$0xff] }
 0x22f   :  { %477 = vst.msk [vmem:[#allocation2 + $0x10] sm:$0xff] %vm476_vm14, %v469_v34 }
 0x230   :  { %v478_v35 = vld [vmem:[#allocation2] sm:$0xff] }
 0x231   :  { %481 = vst [vmem:[#allocation4] sm:$0xff] %v478_v35  ;;  %510 = vrot.lane.b32.xlu0 %v478_v35, %s1648_s3  ;;  %490 = vrot.lane.b32.xlu1 %v478_v35, %s1646_s24 }
 0x235   :  { %550 = vrot.lane.b32.xlu0 %v478_v35, %s1650_s0  ;;  %530 = vrot.lane.b32.xlu1 %v478_v35, %s1649_s15 }
 0x236   :  { %v480_v36 = vld [vmem:[#allocation2 + $0x10] sm:$0xff] }
 0x237   :  { %483 = vst.msk [vmem:[#allocation4 + $0x10] sm:$0xff] %vm79_vm0, %v480_v36 }
 0x239   :  { %590 = vrot.lane.b32.xlu0 %v478_v35, %s1652_s26  ;;  %570 = vrot.lane.b32.xlu1 %v478_v35, %s1651_s25 }
 0x23d   :  { %494 = vrot.lane.b32.xlu0 %v480_v36, %s1646_s24  ;;  %492 = vrot.lane.b32.xlu1 %v468_v33, %s1646_s24 }
 0x23e   :  { %v647_v56 = vld [vmem:[#allocation4 + $0x10] sm:$0xff] }
 0x241   :  { %512 = vrot.lane.b32.xlu0 %v468_v33, %s1648_s3  ;;  %514 = vrot.lane.b32.xlu1 %v480_v36, %s1648_s3 }
 0x245   :  { %532 = vrot.lane.b32.xlu0 %v468_v33, %s1649_s15  ;;  %534 = vrot.lane.b32.xlu1 %v480_v36, %s1649_s15 }
 0x249   :  { %552 = vrot.lane.b32.xlu0 %v468_v33, %s1650_s0  ;;  %554 = vrot.lane.b32.xlu1 %v480_v36, %s1650_s0  ;;  %s1664_s0 = smov [#allocation12]  }
 0x24d   :  { %572 = vrot.lane.b32.xlu0 %v468_v33, %s1651_s25  ;;  %574 = vrot.lane.b32.xlu1 %v480_v36, %s1651_s25 }
 0x251   :  { %592 = vrot.lane.b32.xlu0 %v468_v33, %s1652_s26  ;;  %594 = vrot.lane.b32.xlu1 %v480_v36, %s1652_s26  ;;  %s1665_s26 = smov [#allocation11]  }
 0x255   :  { %612 = vrot.lane.b32.xlu0 %v468_v33, %s1653_s29  ;;  %614 = vrot.lane.b32.xlu1 %v480_v36, %s1653_s29 }
 0x259   :  { %632 = vrot.lane.b32.xlu0 %v468_v33, %s1656_s30  ;;  %610 = vrot.lane.b32.xlu1 %v478_v35, %s1653_s29  ;;  %s1172_s29 = sshll.u32 %s1665_s26, 4  ;;  %s1173_s29 = int_to_ptr.vmem [resolvable:$true] %s1172_s29 }
 0x25d   :  { %630 = vrot.lane.b32.xlu0 %v478_v35, %s1656_s30  ;;  %634 = vrot.lane.b32.xlu1 %v480_v36, %s1656_s30 }
 0x261   :  { %675 = vperm.xlu1 %1500, %v672_v37  }
 0x2a3   :  { %v511_v38 = vpop.permute.xlu0 %510  ;;  %v491_v39 = vpop.permute.xlu1 %490 }
 0x2a7   :  { %v551_v40 = vpop.permute.xlu0 %550  ;;  %v531_v41 = vpop.permute.xlu1 %530 }
 0x2ab   :  { %v591_v42 = vpop.permute.xlu0 %590  ;;  %v571_v43 = vpop.permute.xlu1 %570 }
 0x2af   :  { %v495_v44 = vpop.permute.xlu0 %494  ;;  %v493_v45 = vpop.permute.xlu1 %492 }
 0x2b0   :  { %503 = vst.msk [vmem:[#allocation4 + $0x28] sm:$0xff] %vm79_vm0, %v495_v44  ;;  %v496_v46 = vsel %vm93_vm2, %v491_v39, %v493_v45  ;;  %v497_v47 = vsel %vm93_vm2, %v493_v45, %v495_v44  ;;  %v1421_v44 = vpack.c.bf16 %v829_v32, %v828_v31 }
 0x2b1   :  { %501 = vst [vmem:[#allocation4 + $0x18] sm:$0xff] %v496_v46  ;;  %v1391_v48 = vpack.c.bf16 %v497_v47, %v468_v33  ;;  %v1393_v49 = vpack.c.bf16 %v496_v46, %v478_v35  ;;  %v846_v33 = vld [vmem:[#allocation8 + $0x90] sm:$0xff]  ;;  %v831_v47 = vld [vmem:[#allocation8 + $0x18] sm:$0xff] }
 0x2b2   :  { %v830_v46 = vld [vmem:[#allocation8 + $0x10] sm:$0xff] }
 0x2b3   :  { %v513_v50 = vpop.permute.xlu0 %512  ;;  %v515_v51 = vpop.permute.xlu1 %514  ;;  %1392 = vmatprep.subr.bf16.mxu0 %v1391_v48  ;;  %v848_v48 = vld [vmem:[#allocation8 + $0xa0] sm:$0xff] }
 0x2b4   :  { %v516_v52 = vsel %vm114_vm3, %v511_v38, %v513_v50  ;;  %v517_v53 = vsel %vm114_vm3, %v513_v50, %v515_v51  ;;  %523 = vst.msk [vmem:[#allocation4 + $0x40] sm:$0xff] %vm79_vm0, %v515_v51  ;;  %1394 = vmatpush1.bf16.msra.mxu0 %v1393_v49  ;;  %v847_v38 = vld [vmem:[#allocation8 + $0x98] sm:$0xff]  ;;  %v849_v49 = vld [vmem:[#allocation8 + $0xa8] sm:$0xff]  ;;  %v860_v50 = vld [vmem:[#allocation8 + $0x100] sm:$0xff] }
 0x2b5   :  { %521 = vst [vmem:[#allocation4 + $0x30] sm:$0xff] %v516_v52  ;;  %v1423_v45 = vpack.c.bf16 %v847_v38, %v846_v33  ;;  %v861_v51 = vld [vmem:[#allocation8 + $0x108] sm:$0xff] }
 0x2b7   :  { %v533_v54 = vpop.permute.xlu0 %532  ;;  %v535_v55 = vpop.permute.xlu1 %534  ;;  %v650_v57 = vld [vmem:[#allocation4 + $0x28] sm:$0xff] }
 0x2b8   :  { %v536_v58 = vsel %vm135_vm4, %v531_v41, %v533_v54  ;;  %v537_v59 = vsel %vm135_vm4, %v533_v54, %v535_v55  ;;  %543 = vst.msk [vmem:[#allocation4 + $0x58] sm:$0xff] %vm79_vm0, %v535_v55  ;;  %v1408_v60 = vpack.c.bf16 %v650_v57, %v647_v56  ;;  %v832_v54 = vld [vmem:[#allocation8 + $0x20] sm:$0xff]  ;;  %v833_v55 = vld [vmem:[#allocation8 + $0x28] sm:$0xff]  ;;  %v850_v57 = vld [vmem:[#allocation8 + $0xb0] sm:$0xff] }
 0x2b9   :  { %541 = vst [vmem:[#allocation4 + $0x48] sm:$0xff] %v536_v58  ;;  %v1395_v61 = vpack.c.bf16 %v537_v59, %v517_v53  ;;  %v1397_v62 = vpack.c.bf16 %v536_v58, %v516_v52  ;;  %v1425_v52 = vpack.c.bf16 %v831_v47, %v830_v46  ;;  %v1427_v53 = vpack.c.bf16 %v849_v49, %v848_v48  ;;  %v851_v58 = vld [vmem:[#allocation8 + $0xb8] sm:$0xff]  ;;  %v1072_v46 = vld [vmem:[%s1986_s8 + $0x8] sm:$0xff]  ;;  %v1071_v47 = vld [vmem:[%s1986_s8] sm:$0xff] }
 0x2ba   :  { %1409 = vmatpush3.bf16.msra.mxu1 %v1408_v60  ;;  %v1452_v59 = vpack.c.bf16 %v861_v51, %v860_v50  ;;  %v1429_v60 = vpack.c.bf16 %v833_v55, %v832_v54  ;;  %v1060_v48 = vld [vmem:[%s1985_s7] sm:$0xff] }
 0x2bb   :  { %v553_v63 = vpop.permute.xlu0 %552  ;;  %v555_v0 = vpop.permute.xlu1 %554  ;;  %1410 = vmatprep.subr.bf16.mxu1 %v1647_v3  ;;  %1396 = vmatprep.subr.bf16.mxu0 %v1395_v61  ;;  %v653_v7 = vld [vmem:[#allocation4 + $0x40] sm:$0xff]  ;;  %v1431_v61 = vpack.c.bf16 %v851_v58, %v850_v57 }
 0x2bc   :  { %v556_v1 = vsel %vm156_vm5, %v551_v40, %v553_v63  ;;  %v557_v2 = vsel %vm156_vm5, %v553_v63, %v555_v0  ;;  %563 = vst.msk [vmem:[#allocation4 + $0x70] sm:$0xff] %vm79_vm0, %v555_v0  ;;  %1398 = vmatpush1.bf16.msra.mxu0 %v1397_v62  ;;  %v834_v62 = vld [vmem:[#allocation8 + $0x30] sm:$0xff]  ;;  %v835_v63 = vld [vmem:[#allocation8 + $0x38] sm:$0xff]  ;;  %v852_v0 = vld [vmem:[#allocation8 + $0xc0] sm:$0xff] }
 0x2bd   :  { %561 = vst [vmem:[#allocation4 + $0x60] sm:$0xff] %v556_v1 }
 0x2bf   :  { %v573_v5 = vpop.permute.xlu0 %572  ;;  %v575_v6 = vpop.permute.xlu1 %574  ;;  %v656_v8 = vld [vmem:[#allocation4 + $0x58] sm:$0xff] }
 0x2c0   :  { %v576_v9 = vsel %vm177_vm6, %v571_v43, %v573_v5  ;;  %v577_v10 = vsel %vm177_vm6, %v573_v5, %v575_v6  ;;  %583 = vst.msk [vmem:[#allocation4 + $0x88] sm:$0xff] %vm79_vm0, %v575_v6  ;;  %v1411_v11 = vpack.c.bf16 %v656_v8, %v653_v7  ;;  %v644_v43 = vld [vmem:[%s1983_s5] sm:$0xff]  ;;  %v854_v8 = vld [vmem:[#allocation8 + $0xd0] sm:$0xff]  ;;  %s1659_s5 = smov 117  }
 0x2c1   :  { %581 = vst [vmem:[#allocation4 + $0x78] sm:$0xff] %v576_v9  ;;  %v1399_v12 = vpack.c.bf16 %v577_v10, %v557_v2  ;;  %v1401_v13 = vpack.c.bf16 %v576_v9, %v556_v1  ;;  %v853_v1 = vld [vmem:[#allocation8 + $0xc8] sm:$0xff]  ;;  %v1433_v2 = vpack.c.bf16 %v835_v63, %v834_v62  ;;  %v836_v6 = vld [vmem:[#allocation8 + $0x40] sm:$0xff]  ;;  %v855_v9 = vld [vmem:[#allocation8 + $0xd8] sm:$0xff] }
 0x2c2   :  { %1412 = vmatpush3.bf16.msra.mxu1 %v1411_v11  ;;  %v1435_v5 = vpack.c.bf16 %v853_v1, %v852_v0  ;;  %v837_v7 = vld [vmem:[#allocation8 + $0x48] sm:$0xff]  ;;  %v1439_v11 = vpack.c.bf16 %v855_v9, %v854_v8 }
 0x2c3   :  { %v593_v14 = vpop.permute.xlu0 %592  ;;  %v595_v15 = vpop.permute.xlu1 %594  ;;  %1413 = vmatprep.subr.bf16.mxu1 %v1647_v3  ;;  %1400 = vmatprep.subr.bf16.mxu0 %v1399_v12  ;;  %v659_v20 = vld [vmem:[#allocation4 + $0x70] sm:$0xff]  ;;  %v1437_v10 = vpack.c.bf16 %v837_v7, %v836_v6  ;;  %v1061_v8 = vld [vmem:[%s1985_s7 + $0x8] sm:$0xff] }
 0x2c4   :  { %v596_v16 = vsel %vm198_vm7, %v591_v42, %v593_v14  ;;  %v597_v17 = vsel %vm198_vm7, %v593_v14, %v595_v15  ;;  %603 = vst.msk [vmem:[#allocation4 + $0xa0] sm:$0xff] %vm79_vm0, %v595_v15  ;;  %1402 = vmatpush1.bf16.msra.mxu0 %v1401_v13  ;;  %v1419_v42 = vpack.c.bf16 %v845_v30, %v844_v29  ;;  %v838_v12 = vld [vmem:[#allocation8 + $0x50] sm:$0xff]  ;;  %v839_v13 = vld [vmem:[#allocation8 + $0x58] sm:$0xff]  ;;  %v856_v14 = vld [vmem:[#allocation8 + $0xe0] sm:$0xff] }
 0x2c5   :  { %601 = vst [vmem:[#allocation4 + $0x90] sm:$0xff] %v596_v16  ;;  %v857_v15 = vld [vmem:[#allocation8 + $0xe8] sm:$0xff] }
 0x2c7   :  { %v613_v18 = vpop.permute.xlu0 %612  ;;  %v615_v19 = vpop.permute.xlu1 %614  ;;  %v662_v21 = vld [vmem:[#allocation4 + $0x88] sm:$0xff] }
 0x2c8   :  { %v617_v22 = vsel %vm219_vm8, %v613_v18, %v615_v19  ;;  %623 = vst.msk [vmem:[#allocation4 + $0xb8] sm:$0xff] %vm79_vm0, %v615_v19  ;;  %v1414_v23 = vpack.c.bf16 %v662_v21, %v659_v20  ;;  %v858_v19 = vld [vmem:[#allocation8 + $0xf0] sm:$0xff]  ;;  %v859_v20 = vld [vmem:[#allocation8 + $0xf8] sm:$0xff] }
 0x2c9   :  { %v1403_v24 = vpack.c.bf16 %v617_v22, %v597_v17  ;;  %v841_v17 = vld [vmem:[#allocation8 + $0x68] sm:$0xff]  ;;  %v1447_v21 = vpack.c.bf16 %v859_v20, %v858_v19  ;;  %v842_v22 = vld [vmem:[#allocation8 + $0x70] sm:$0xff] }
 0x2ca   :  { %1415 = vmatpush3.bf16.msra.mxu1 %v1414_v23  ;;  %v843_v23 = vld [vmem:[#allocation8 + $0x78] sm:$0xff] }
 0x2cb   :  { %v633_v25 = vpop.permute.xlu0 %632  ;;  %v611_v26 = vpop.permute.xlu1 %610  ;;  %1416 = vmatprep.subr.bf16.mxu1 %v1647_v3  ;;  %1404 = vmatprep.subr.bf16.mxu0 %v1403_v24  ;;  %v665_v36 = vld [vmem:[#allocation4 + $0xa0] sm:$0xff]  ;;  %v1449_v24 = vpack.c.bf16 %v843_v23, %v842_v22 }
 0x2cc   :  { %v616_v27 = vsel %vm219_vm8, %v611_v26, %v613_v18  ;;  %v863_v26 = vld [vmem:[#allocation8 + $0x118] sm:$0xff] }
 0x2cd   :  { %621 = vst [vmem:[#allocation4 + $0xa8] sm:$0xff] %v616_v27  ;;  %v1405_v28 = vpack.c.bf16 %v616_v27, %v596_v16  ;;  %v840_v16 = vld [vmem:[#allocation8 + $0x60] sm:$0xff] }
 0x2ce   :  { %v1445_v18 = vpack.c.bf16 %v841_v17, %v840_v16 }
 0x2cf   :  { %v631_v34 = vpop.permute.xlu0 %630  ;;  %v635_v35 = vpop.permute.xlu1 %634  ;;  %v668_v37 = vld [vmem:[#allocation4 + $0xb8] sm:$0xff]  ;;  %1406 = vmatpush1.bf16.msra.mxu0 %v1405_v28 }
 0x2d0   :  { %v636_v39 = vsel %vm240_vm9, %v631_v34, %v633_v25  ;;  %v637_v40 = vsel %vm240_vm9, %v633_v25, %v635_v35  ;;  %643 = vst.msk [vmem:[#allocation4 + $0xd0] sm:$0xff] %vm79_vm0, %v635_v35  ;;  %v1417_v41 = vpack.c.bf16 %v668_v37, %v665_v36  ;;  %v862_v25 = vld [vmem:[#allocation8 + $0x110] sm:$0xff] }
 0x2d1   :  { %641 = vst [vmem:[#allocation4 + $0xc0] sm:$0xff] %v636_v39  ;;  %697 = vmatprep.subr.mxu0 %v637_v40  ;;  %v1455_v27 = vpack.c.bf16 %v863_v26, %v862_v25 }
 0x2d2   :  { %1418 = vmatpush3.bf16.msra.mxu1 %v1417_v41 }
 0x2d3   :  { %1326 = vmatprep.subr.mxu1 %v1654_v4  ;;  %698 = vmatpush1.msra.mxu0 %v636_v39 }
 0x2d4   :  { %1213 = vmatmul.mubr.msk.f32.vlgmr.msra.gmra.mrb[2].mxu0 %vm283_vm10, %v644_v43  ;;  %1420 = vmatprep.subr.bf16.mxu0 %v1419_v42 }
 0x2d5   :  { %1422 = vmatpush3.bf16.msra.mxu0 %v1421_v44 }
 0x2d6   :  { %1424 = vmatprep.subr.bf16.mxu0 %v1423_v45 }
 0x2d7   :  { %v671_v56 = vld [vmem:[#allocation4 + $0xd0] sm:$0xff] }
 0x2d8   :  { %1327 = vmatpush3.msra.mxu1 %v671_v56 }
 0x2d9   :  { %1329 = vmatmul.mubr.msk.f32.vlgmr.msra.gmra.mrb[2].mxu1 %vm283_vm10, %v644_v43  ;;  %1426 = vmatpush3.bf16.msra.mxu0 %v1425_v52 }
 0x2da   :  { %1428 = vmatprep.subr.bf16.mxu0 %v1427_v53  ;;  %1451 = vmatprep.subr.bf16.mxu1 %v1647_v3 }
 0x2db   :  { %1453 = vmatpush3.bf16.msra.mxu1 %v1452_v59  ;;  %1339 = vmatprep.mubr.msk.f32.mxu1 %vm1655_vm1, %v1654_v4  ;;  %v1441_v4 = vpack.c.bf16 %v839_v13, %v838_v12  ;;  %vm1010_vm1 = vcmask 654336  }
 0x2dc   :  { %1454 = vmatprep.subr.bf16.mxu1 %v1647_v3  ;;  %v1443_v3 = vpack.c.bf16 %v857_v15, %v856_v14 }
 0x2dd   :  { %1430 = vmatpush3.bf16.msra.mxu0 %v1429_v60 }
 0x2de   :  { %1432 = vmatprep.subr.bf16.mxu0 %v1431_v61 }
 0x2df   :  { %1456 = vmatpush3.bf16.msra.mxu1 %v1455_v27 }
 0x2e0   :  { %v676_v28 = vpop.permute.xlu1 %675 }
 0x2e1   :  { %1434 = vmatpush3.bf16.msra.mxu0 %v1433_v2 }
 0x2e2   :  { %1436 = vmatprep.subr.bf16.mxu0 %v1435_v5 }
 0x2e5   :  { %1438 = vmatpush3.bf16.msra.mxu0 %v1437_v10 }
 0x2e6   :  { %1440 = vmatprep.subr.bf16.mxu0 %v1439_v11 }
 0x2e9   :  { %1442 = vmatpush3.bf16.msra.mxu0 %v1441_v4 }
 0x2ea   :  { %1444 = vmatprep.subr.bf16.mxu0 %v1443_v3 }
 0x2ed   :  { %1446 = vmatpush3.bf16.msra.mxu0 %v1445_v18 }
 0x2ee   :  { %1448 = vmatprep.subr.bf16.mxu0 %v1447_v21 }
 0x2f1   :  { %1450 = vmatpush3.bf16.msra.mxu0 %v1449_v24 }
 0x3a7   :  { %v747_v29 = vpop.f32.mrb[2].mxu0 }
 0x3a8   :  { %v748_v30 = vadd.f32 %v747_v29, %v676_v28  ;;  %v749_v31 = vpop.f32.mrb[3].mxu0 }
 0x3a9   :  { %v750_v32 = vadd.f32 %v749_v31, %v676_v28 }
 0x3aa   :  { %v822_v33 = vmax.f32 %v748_v30, 0.0 }
 0x3ab   :  { %v823_v34 = vmax.f32 %v750_v32, 0.0 }
 0x3ac   :  { %v818_v35 = vpop.f32.mrb[2].mxu1  ;;  %825 = vst [vmem:[#allocation12] sm:$0xff] %v822_v33 }
 0x3ad   :  { %v819_v36 = vadd.f32 %v818_v35, %v676_v28  ;;  %826 = vst [vmem:[#allocation12 + $0x8] sm:$0xff] %v823_v34  ;;  %v1330_v37 = vpop.f32.mrb[3].mxu1  ;;  %931 = vmatprep.mubr.f32.mxu0 %v823_v34 }
 0x3ae   :  { %932 = vmatmul.mubr.f32.vlgmr.msra.gmra.mrb[4].mxu0 %v822_v33 }
 0x3af   :  { %v824_v38 = vmax.f32 %v819_v36, 0.0 }
 0x3b1   :  { %827 = vst.msk [vmem:[#allocation12 + $0x10] sm:$0xff] %vm79_vm0, %v824_v38  ;;  %1340 = vmatmul.mubr.msk.f32.vlgmr.msra.gmra.mrb[4].mxu1 %vm79_vm0, %v824_v38 }
 0x3b2   :  { %1360 = vmatprep.mubr.msk.f32.mxu1 %vm283_vm10, %v1060_v48 }
 0x481   :  { %v1270_v39 = vpop.f32.mrb[4].mxu0 }
 0x482   :  { %v1271_v40 = vpop.f32.mrb[5].mxu0 }
 0x483   :  { %v1272_v41 = vadd.f32 %v1271_v40, %v1270_v39 }
 0x484   :  { %v1003_v42 = vpop.f32.mrb[4].mxu1 }
 0x485   :  { %v1341_v43 = vpop.f32.mrb[5].mxu1  ;;  %v1004_v44 = vadd.f32 %v1272_v41, %v1003_v42 }
 0x487   :  { %1008 = vst.msk [vmem:[#allocation3] sm:$0xff] %vm1007_vm15, %v1004_v44 }
 0x48e   :  { %v1009_v45 = vld [vmem:[#allocation3] sm:$0xff] }
 0x48f   :  { %1020 = vrot.lane.b32.xlu1 %v1009_v45, %s1648_s3  ;;  %1014 = vrot.lane.b32.xlu0 %v1009_v45, %s1646_s24  ;;  %1011 = vst.msk [vmem:[#allocation4] sm:$0xff] %vm1010_vm1, %v1009_v45 }
 0x493   :  { %1032 = vrot.lane.b32.xlu1 %v1009_v45, %s1659_s5  ;;  %1026 = vrot.lane.b32.xlu0 %v1009_v45, %s1660_s1 }
 0x496   :  { %v1062_v55 = vld [vmem:[#allocation4] sm:$0xff] }
 0x497   :  { %1044 = vrot.lane.b32.xlu1 %v1009_v45, %s1651_s25  ;;  %1038 = vrot.lane.b32.xlu0 %v1009_v45, %s1661_s13  ;;  %s1182_s25 = sshll.u32 %s1664_s0, 4  ;;  %s1183_s25 = int_to_ptr.vmem [resolvable:$true] %s1182_s25 }
 0x498   :  { %s1567_s30 = scalar_lea.vmem %s1183_s25, 384  ;;  %p1572_p11 = scmp.lt.s32.totalorder %s1183_s25, %s1183_s25 }
 0x499   :  { %p1568_p10 = scmp.ne.s32.totalorder %s1183_s25, %s1567_s30  ;;  %p1573_p12 = scmp.lt.s32.totalorder %s1567_s30, %s1567_s30 }
 0x49b   :  { %1056 = vrot.lane.b32.xlu1 %v1009_v45, %s1662_s20  ;;  %1050 = vrot.lane.b32.xlu0 %v1009_v45, %s1663_s21  ;;  %p1574_p13 = por %p1573_p12, %p1572_p11 }
 0x49d   :  { %p1575_p0 = pnand %p1574_p13, %p1568_p10 }
 0x49f   :  { %1080 = vperm.xlu1 %1500, %v1072_v46   ;;  %1075 = vperm.xlu0 %1499, %v1071_v47  }
 0x501   :  { %v1021_v49 = vpop.permute.xlu1 %1020  ;;  %v1015_v50 = vpop.permute.xlu0 %1014 }
 0x502   :  { %1023 = vst.msk [vmem:[#allocation4 + $0x30] sm:$0xff] %vm1010_vm1, %v1021_v49  ;;  %1017 = vst.msk [vmem:[#allocation4 + $0x18] sm:$0xff] %vm1010_vm1, %v1015_v50 }
 0x505   :  { %v1033_v51 = vpop.permute.xlu1 %1032  ;;  %v1027_v52 = vpop.permute.xlu0 %1026 }
 0x506   :  { %1035 = vst.msk [vmem:[#allocation4 + $0x60] sm:$0xff] %vm1010_vm1, %v1033_v51  ;;  %1029 = vst.msk [vmem:[#allocation4 + $0x48] sm:$0xff] %vm1010_vm1, %v1027_v52 }
 0x509   :  { %v1045_v53 = vpop.permute.xlu1 %1044  ;;  %v1039_v54 = vpop.permute.xlu0 %1038  ;;  %v1063_v56 = vld [vmem:[#allocation4 + $0x18] sm:$0xff]  ;;  %v1064_v60 = vld [vmem:[#allocation4 + $0x30] sm:$0xff] }
 0x50a   :  { %1047 = vst.msk [vmem:[#allocation4 + $0x90] sm:$0xff] %vm1010_vm1, %v1045_v53  ;;  %1041 = vst.msk [vmem:[#allocation4 + $0x78] sm:$0xff] %vm1010_vm1, %v1039_v54  ;;  %v1457_v57 = vpack.c.bf16 %v1063_v56, %v1062_v55 }
 0x50c   :  { %1458 = vmatprep.subr.bf16.mxu1 %v1457_v57 }
 0x50d   :  { %v1057_v58 = vpop.permute.xlu1 %1056  ;;  %v1051_v59 = vpop.permute.xlu0 %1050  ;;  %1460 = vmatpush3.bf16.msra.mxu1 %v1457_v57  ;;  %v1065_v61 = vld [vmem:[#allocation4 + $0x48] sm:$0xff]  ;;  %v1066_v63 = vld [vmem:[#allocation4 + $0x60] sm:$0xff] }
 0x50e   :  { %1059 = vst.msk [vmem:[#allocation4 + $0xc0] sm:$0xff] %vm1010_vm1, %v1057_v58  ;;  %1053 = vst.msk [vmem:[#allocation4 + $0xa8] sm:$0xff] %vm1010_vm1, %v1051_v59  ;;  %v1461_v62 = vpack.c.bf16 %v1065_v61, %v1064_v60 }
 0x510   :  { %1462 = vmatprep.subr.bf16.mxu1 %v1461_v62 }
 0x511   :  { %1464 = vmatpush3.bf16.msra.mxu1 %v1461_v62  ;;  %v1067_v0 = vld [vmem:[#allocation4 + $0x78] sm:$0xff]  ;;  %v1068_v2 = vld [vmem:[#allocation4 + $0x90] sm:$0xff] }
 0x512   :  { %v1465_v1 = vpack.c.bf16 %v1067_v0, %v1066_v63 }
 0x514   :  { %1466 = vmatprep.subr.bf16.mxu1 %v1465_v1 }
 0x515   :  { %1468 = vmatpush3.bf16.msra.mxu1 %v1465_v1  ;;  %v1069_v5 = vld [vmem:[#allocation4 + $0xa8] sm:$0xff]  ;;  %v1070_v7 = vld [vmem:[#allocation4 + $0xc0] sm:$0xff] }
 0x516   :  { %v1469_v6 = vpack.c.bf16 %v1069_v5, %v1068_v2 }
 0x518   :  { %1470 = vmatprep.subr.bf16.mxu1 %v1469_v6 }
 0x519   :  { %1472 = vmatpush3.bf16.msra.mxu1 %v1469_v6 }
 0x51a   :  { %1358 = vmatprep.subr.mxu1 %v1070_v7 }
 0x51d   :  { %1359 = vmatpush3.msra.mxu1 %v1070_v7 }
 0x51e   :  { %1361 = vmatmul.mubr.msk.f32.vlgmr.msra.gmra.mrb[6].mxu1 %vm283_vm10, %v1061_v8 }
 0x51f   :  { %1578 = shalt.err (!%p1575_p0)
}
 0x520   :  { %s1579_s4 = scalar_lea.hbm %s1988_s10, 384 }
 0x521   :  { %p1580_p1 = scmp.ne.s32.totalorder %s1988_s10, %s1579_s4  ;;  %p1583_p2 = scmp.lt.u32.totalorder %s1579_s4, %s1988_s10 }
 0x523   :  { %p1585_p3 = pnand %p1583_p2, %p1580_p1 }
 0x525   :  { %1588 = shalt.err (!%p1585_p3)
}
 0x526   :  { %1185 = dma.vmem_to_hbm [thread:$0]  %s1183_s25, 384, %s1988_s10, [#allocation13]  }
 0x527   :  { %s1589_s1 = scalar_lea.vmem %s1173_s29, 384  ;;  %p1594_p5 = scmp.lt.s32.totalorder %s1173_s29, %s1173_s29 }
 0x528   :  { %p1590_p4 = scmp.ne.s32.totalorder %s1173_s29, %s1589_s1  ;;  %p1595_p6 = scmp.lt.s32.totalorder %s1589_s1, %s1589_s1 }
 0x52a   :  { %p1596_p7 = por %p1595_p6, %p1594_p5 }
 0x52c   :  { %p1597_p8 = pnand %p1596_p7, %p1590_p4 }
 0x52e   :  { %1600 = shalt.err (!%p1597_p8)
}
 0x52f   :  { %s1601_s21 = scalar_lea.hbm %s1987_s9, 384 }
 0x530   :  { %p1602_p9 = scmp.ne.s32.totalorder %s1987_s9, %s1601_s21  ;;  %p1605_p10 = scmp.lt.u32.totalorder %s1601_s21, %s1987_s9 }
 0x532   :  { %p1607_p11 = pnand %p1605_p10, %p1602_p9 }
 0x534   :  { %1610 = shalt.err (!%p1607_p11)
}
 0x535   :  { %1175 = dma.vmem_to_hbm [thread:$0]  %s1173_s29, 384, %s1987_s9, [#allocation7]   ;;  %v1081_v9 = vpop.permute.xlu1 %1080  ;;  %v1076_v11 = vpop.permute.xlu0 %1075 }
 0x536   :  { %s1666_s3 = smov [#allocation14]  }
 0x537   :  { %s1191_s8 = sshll.u32 %s1666_s3, 4  ;;  %s1192_s8 = int_to_ptr.vmem [resolvable:$true] %s1191_s8 }
 0x538   :  { %s1611_s15 = scalar_lea.vmem %s1192_s8, 256  ;;  %p1616_p13 = scmp.lt.s32.totalorder %s1192_s8, %s1192_s8 }
 0x539   :  { %p1612_p12 = scmp.ne.s32.totalorder %s1192_s8, %s1611_s15  ;;  %p1617_p0 = scmp.lt.s32.totalorder %s1611_s15, %s1611_s15 }
 0x53b   :  { %p1618_p1 = por %p1617_p0, %p1616_p13 }
 0x53d   :  { %p1619_p2 = pnand %p1618_p1, %p1612_p12 }
 0x5f1   :  { %v1362_v10 = vpop.f32.mrb[6].mxu1 }
 0x5f2   :  { %v1161_v12 = vadd.f32 %v1362_v10, %v1081_v9  ;;  %v1155_v13 = vpop.f32.mrb[7].mxu1 }
 0x5f3   :  { %v1156_v14 = vadd.f32 %v1155_v13, %v1076_v11 }
 0x5f4   :  { %1165 = vst.msk [vmem:[#allocation14 + $0x8] sm:$0xff] %vm1010_vm1, %v1161_v12 }
 0x5f5   :  { %1164 = vst.msk [vmem:[#allocation14] sm:$0xff] %vm1010_vm1, %v1156_v14 }
 0x5f6   :  { %1622 = shalt.err (!%p1619_p2)
}
 0x5f7   :  { %s1623_s25 = scalar_lea.hbm %s1989_s11, 256 }
 0x5f8   :  { %p1624_p3 = scmp.ne.s32.totalorder %s1989_s11, %s1623_s25  ;;  %p1627_p4 = scmp.lt.u32.totalorder %s1623_s25, %s1989_s11 }
 0x5fa   :  { %p1629_p5 = pnand %p1627_p4, %p1624_p3 }
 0x5fc   :  { %1632 = shalt.err (!%p1629_p5)
}
 0x5fd   :  { %1197 = dma.vmem_to_hbm [thread:$0]  %s1192_s8, 256, %s1989_s11, [#allocation13], %s1642_s27, %s1642_s27, %s1643_s28  }
 0x5fe   :  { %1637 = dma.done.wait [#allocation7], 384  }
 0x5ff   :  { %1638 = vsyncadd [#allocation7], 4294966912 }
 0x600   :  { %1639 = dma.done.wait [#allocation13], 640  }
 0x601   :  { %1640 = vsyncadd [#allocation13], 4294966656 }
 0x602   :  { %1207 = vsyncpa [#allocation6], 1 }
 0x603   :  { %1208 = vsyncpa [#allocation9], 1 }
 0x604   :  { %1209 = vsyncpa [#allocation7], 1 }
 0x605   :  { %1210 = vsyncpa [#allocation13], 1 }

</bundles_post_ra>
